<compile_context>
chip_gen: v7x
topology: tpu7x:2x2x1
jax: 0.10.0
libtpu: 0.0.40
codegen_flags: <defaults>
</compile_context>

<pallas_src>
import functools

import jax
import jax.numpy as jnp
from jax.experimental import pallas as pl
from jax.experimental.pallas import tpu as pltpu

DT = 0.001       # norse LIFBoxCell dt
V_TH = 0.1       # TemporalRF('lif') v_th
V_LEAK = 0.0     # LIFBoxParameters default
V_RESET = 0.0    # LIFBoxParameters default


def _st_rf_kernel(x_ref, nrow_ref, wband_ref, v_ref, spk_ref, vout_ref, *, H2, K, alpha):
    """One batch element: pool + conv via (K+1) matmuls, then LIFBox step.

    x_ref    : (1, Hp, C_in*Wp)        bf16  image zero-padded by 2*(K//2), height-major
    nrow_ref : (H2p, Hp)               bf16  row-pool matrix (0.5 at [r,2r] and [r,2r+1])
    wband_ref: (K, C_in*Wp, C_out*W2)  bf16  banded weight: column pool + dj taps + C mixing
    v_ref    : (1, H2, C_out*W2)       f32   membrane state (aliased to vout_ref)
    spk_ref  : (1, H2, C_out*W2)       bf16  spikes (0/1)
    vout_ref : (1, H2, C_out*W2)       f32   new membrane state
    """
    x = x_ref[0]                                                        # (Hp, C_in*Wp)

    # --- 2x2 pool, row direction (all channels at once, one MXU matmul) ---
    # rowpooled[r, :] = 0.5 * (x[2r, :] + x[2r+1, :])
    rp = jnp.dot(nrow_ref[...], x, preferred_element_type=jnp.float32)  # (H2p, C_in*Wp)
    rp = rp.astype(jnp.bfloat16)

    # --- Conv2d(K, 'same') with the column pool folded into the banded weight ---
    # out[i, o*W2+j] = sum_di  rowpooled[i+di, :] @ wband[di]
    acc = jnp.dot(rp[0:H2, :], wband_ref[0], preferred_element_type=jnp.float32)
    for di in range(1, K):                      # static unroll, K is small (e.g. 3)
        acc += jnp.dot(rp[di:di + H2, :], wband_ref[di],
                       preferred_element_type=jnp.float32)              # (H2, C_out*W2) f32

    # --- LIFBoxCell step (v_leak = v_reset = 0, alpha = dt * tau_mem_inv) ---
    v = v_ref[0]
    v_dec = (1.0 - alpha) * v + alpha * acc
    z = v_dec >= V_TH                           # norse heaviside fires at v == v_th too
    spk_ref[0] = z.astype(spk_ref.dtype)
    vout_ref[0] = jnp.where(z, V_RESET, v_dec)


def _const_spec(shape):
    """BlockSpec for a grid-invariant operand; single resident buffer if supported."""
    index_map = lambda b: (0,) * len(shape)
    if hasattr(pl, "Buffered"):
        try:
            return pl.BlockSpec(shape, index_map, pipeline_mode=pl.Buffered(1))
        except TypeError:
            pass
    return pl.BlockSpec(shape, index_map)


def _banded_conv_weight(w_oihw, W2, Wp):
    """(K, C_in*Wp, C_out*W2) bf16: column 2x pool + dj taps + channel mixing, folded.

    wband[di, ci*Wp + v, o*W2 + j] = 0.5 * w[o, ci, di, v//2 - j]   if 0 <= v//2 - j < K
                                   = 0                              otherwise
    """
    C_out, C_in, K, _ = w_oihw.shape
    dj = (jnp.arange(Wp)[:, None] // 2) - jnp.arange(W2)[None, :]          # (Wp, W2)
    valid = (dj >= 0) & (dj < K)
    taps = w_oihw[:, :, :, jnp.clip(dj, 0, K - 1)]                         # (C_out,C_in,K,Wp,W2)
    taps = jnp.where(valid[None, None, None], taps, 0.0) * 0.5
    wband = jnp.transpose(taps, (2, 1, 3, 0, 4)).reshape(K, C_in * Wp, C_out * W2)
    return wband.astype(jnp.bfloat16)


def spatio_temporal_rf(x_nchw, w_oihw, tau, v_state=None):
    """Forward pass of SpatioTemporalRF. Returns (spikes, new_membrane_state) in NCHW."""
    B, C_in, H, W = x_nchw.shape
    C_out, _, K, _ = w_oihw.shape
    assert H % 2 == 0 and W % 2 == 0, "AvgPool2d(2) requires even H, W"
    assert K % 2 == 1, "padding='same' implemented here for odd kernel sizes"
    pad = K // 2
    H2, W2 = H // 2, W // 2
    H2p, W2p = H2 + 2 * pad, W2 + 2 * pad
    Hp, Wp = 2 * H2p, 2 * W2p
    CW_in, CW_out = C_in * Wp, C_out * W2
    alpha = DT * float(tau)

    # Height-major layout: rows = padded image rows, lanes = (channel, padded column).
    # Zero-padding the ORIGINAL image by 2*pad commutes with the 2x2 average pool.
    x = jnp.pad(x_nchw.astype(jnp.bfloat16),
                ((0, 0), (0, 0), (2 * pad, 2 * pad), (2 * pad, 2 * pad)))
    x_hm = jnp.transpose(x, (0, 2, 1, 3)).reshape(B, Hp, CW_in)            # (B, Hp, C_in*Wp)

    # Constant operands (built once at trace time, single-buffered in VMEM).
    r = jnp.arange(H2p)[:, None]
    c = jnp.arange(Hp)[None, :]
    nrow = (((c == 2 * r) | (c == 2 * r + 1)) * 0.5).astype(jnp.bfloat16)  # (H2p, Hp)
    wband = _banded_conv_weight(w_oihw, W2, Wp)                            # (K, CW_in, CW_out)

    if v_state is None:
        v_hm = jnp.zeros((B, H2, CW_out), jnp.float32)   # LIFBoxCell init: v = v_leak = 0
    else:
        v_hm = jnp.transpose(v_state.astype(jnp.float32), (0, 2, 1, 3)).reshape(B, H2, CW_out)

    kernel = functools.partial(_st_rf_kernel, H2=H2, K=K, alpha=alpha)

    # TODO(synk): for very large images, add a row-band grid axis (halo of `pad` pooled rows)
    # and/or a width tile so wband and the per-step blocks fit v7x's 64 MiB/TC VMEM; mark the
    # band axis "parallel" so both v7x TensorCores are busy even at B=1.
    # TODO(synk): for many tiny images, pack several batch elements per grid step along the
    # row axis (block-diagonal nrow) to amortize the ~0.35 us/step grid overhead.
    spk_hm, v_new_hm = pl.pallas_call(
        kernel,
        grid=(B,),
        in_specs=[
            pl.BlockSpec((1, Hp, CW_in), lambda b: (b, 0, 0)),
            _const_spec((H2p, Hp)),
            _const_spec((K, CW_in, CW_out)),
            pl.BlockSpec((1, H2, CW_out), lambda b: (b, 0, 0)),
        ],
        out_specs=(
            pl.BlockSpec((1, H2, CW_out), lambda b: (b, 0, 0)),
            pl.BlockSpec((1, H2, CW_out), lambda b: (b, 0, 0)),
        ),
        out_shape=(
            jax.ShapeDtypeStruct((B, H2, CW_out), jnp.bfloat16),   # spikes: 0/1 exact in bf16
            jax.ShapeDtypeStruct((B, H2, CW_out), jnp.float32),    # membrane state
        ),
        # Membrane state updated in place.  The donated buffer is the internal height-major
        # temp, so the caller's v_state array is never clobbered.
        input_output_aliases={3: 1},
        compiler_params=pltpu.CompilerParams(
            dimension_semantics=("parallel",),
            vmem_limit_bytes=40 * 1024 * 1024),
    )(x_hm, nrow, wband, v_hm)

    # Back to the PyTorch NCHW convention (cheap wrapper-side layout ops on the small outputs).
    spk = jnp.transpose(spk_hm.reshape(B, H2, C_out, W2), (0, 2, 1, 3)).astype(jnp.float32)
    v_new = jnp.transpose(v_new_hm.reshape(B, H2, C_out, W2), (0, 2, 1, 3))
    return spk, v_new


def reference(x_nchw, w_oihw, tau, v_state=None):
    """Pure-JAX reference mirroring the PyTorch module forward (bf16 conv, f32 accum)."""
    B, C_in, H, W = x_nchw.shape
    x = x_nchw.astype(jnp.bfloat16).astype(jnp.float32)
    pooled = x.reshape(B, C_in, H // 2, 2, W // 2, 2).mean(axis=(3, 5))
    conv = jax.lax.conv_general_dilated(
        pooled.astype(jnp.bfloat16), w_oihw.astype(jnp.bfloat16),
        window_strides=(1, 1), padding='SAME',
        dimension_numbers=('NCHW', 'OIHW', 'NCHW'),
        preferred_element_type=jnp.float32)
    if v_state is None:
        v_state = jnp.zeros_like(conv)
    v_dec = v_state + DT * tau * ((V_LEAK - v_state) + conv)
    z = (v_dec >= V_TH).astype(jnp.float32)
    v_new = (1.0 - z) * v_dec + z * V_RESET
    return z, v_new, v_dec


if __name__ == "__main__":
    B, C_in, C_out, H, W, K = 2, 4, 8, 16, 16, 3
    tau = 200.0  # tau_mem_inv parameter of TemporalRF

    key = jax.random.PRNGKey(0)
    kx, kw = jax.random.split(key)
    x = jax.random.normal(kx, (B, C_in, H, W), jnp.float32)
    # Conv2d-like weight, shape (C_out, C_in, K, K), fan-in scaled.
    # TODO(synk): norse 'rf' init (spatial_receptive_fields_with_derivatives) not replicated.
    w = jax.random.normal(kw, (C_out, C_in, K, K), jnp.float32) / jnp.sqrt(C_in * K * K)

    fwd = jax.jit(spatio_temporal_rf, static_argnames=("tau",))
    spk, v_new = fwd(x, w, tau=tau)
    jax.block_until_ready((spk, v_new))

    spk_ref, v_ref, vdec_ref = reference(x, w, tau)
    assert spk.shape == (B, C_out, H // 2, W // 2)
    assert v_new.shape == (B, C_out, H // 2, W // 2)

    # Membrane state must match up to bf16 matmul noise, except where a spike decision could
    # legitimately flip because the membrane is numerically at the threshold.
    near_th = jnp.abs(vdec_ref - V_TH) < 3e-3
    v_ok = jnp.abs(v_new - v_ref) < 3e-3
    assert bool(jnp.all(v_ok | near_th)), float(jnp.max(jnp.abs(v_new - v_ref)))
    assert bool(jnp.all((spk == spk_ref) | near_th))

    # Second step: feed the state back (exercises the in-place aliased state path).
    spk2, v2 = fwd(x, w, tau=tau, v_state=v_new)
    jax.block_until_ready((spk2, v2))
    assert v2.shape == v_new.shape

    print("KERNEL_OK")
</pallas_src>

<mosaic_0001>
module attributes {stable_mosaic.version = 11 : i64} {
  func.func @_st_rf_kernel(%arg0: i32, %arg1: memref<1x20x80xbf16, #tpu.memory_space<vmem>>, %arg2: memref<10x20xbf16, #tpu.memory_space<vmem>>, %arg3: memref<3x80x64xbf16, #tpu.memory_space<vmem>>, %arg4: memref<1x8x64xf32, #tpu.memory_space<vmem>>, %arg5: memref<1x8x64xbf16, #tpu.memory_space<vmem>>, %arg6: memref<1x8x64xf32, #tpu.memory_space<vmem>>) attributes {dimension_semantics = [#tpu.dimension_semantics<parallel>], iteration_bounds = array<i64: 2>, scalar_prefetch = 0 : i64, scratch_operands = 0 : i64, tpu.core_type = #tpu.core_type<tc>, window_params = [{transform_indices = @transform_0, window_bounds = array<i64: 1, 20, 80>}, {pipeline_mode = #tpu.pipeline_mode<synchronous>, transform_indices = @transform_1, window_bounds = array<i64: 10, 20>}, {pipeline_mode = #tpu.pipeline_mode<synchronous>, transform_indices = @transform_2, window_bounds = array<i64: 3, 80, 64>}, {transform_indices = @transform_3, window_bounds = array<i64: 1, 8, 64>}, {transform_indices = @transform_4, window_bounds = array<i64: 1, 8, 64>}, {transform_indices = @transform_5, window_bounds = array<i64: 1, 8, 64>}]} {
    %c0 = arith.constant 0 : index
    %c0_0 = arith.constant 0 : index
    %c0_1 = arith.constant 0 : index
    %0 = vector.load %arg1[%c0, %c0_0, %c0_1] : memref<1x20x80xbf16, #tpu.memory_space<vmem>>, vector<1x20x80xbf16>
    %1 = vector.shape_cast %0 : vector<1x20x80xbf16> to vector<20x80xbf16>
    %c0_2 = arith.constant 0 : index
    %c0_3 = arith.constant 0 : index
    %2 = vector.load %arg2[%c0_2, %c0_3] : memref<10x20xbf16, #tpu.memory_space<vmem>>, vector<10x20xbf16>
    %cst = arith.constant dense<0.000000e+00> : vector<10x80xf32>
    %3 = tpu.matmul %2, %1, %cst {dimension_numbers = #tpu.dot_dimension_numbers<[1], [0], [0], [1], [0, 0, 1, 1], [], []>} : vector<10x20xbf16>, vector<20x80xbf16>, vector<10x80xf32> -> vector<10x80xf32>
    %4 = arith.truncf %3 : vector<10x80xf32> to vector<10x80xbf16>
    %5 = vector.extract_strided_slice %4 {offsets = [0, 0], sizes = [8, 80], strides = [1, 1]} : vector<10x80xbf16> to vector<8x80xbf16>
    %c0_4 = arith.constant 0 : index
    %c0_5 = arith.constant 0 : index
    %c0_6 = arith.constant 0 : index
    %6 = vector.load %arg3[%c0_4, %c0_5, %c0_6] : memref<3x80x64xbf16, #tpu.memory_space<vmem>>, vector<1x80x64xbf16>
    %7 = vector.shape_cast %6 : vector<1x80x64xbf16> to vector<80x64xbf16>
    %cst_7 = arith.constant dense<0.000000e+00> : vector<8x64xf32>
    %8 = tpu.matmul %5, %7, %cst_7 {dimension_numbers = #tpu.dot_dimension_numbers<[1], [0], [0], [1], [0, 0, 1, 1], [], []>} : vector<8x80xbf16>, vector<80x64xbf16>, vector<8x64xf32> -> vector<8x64xf32>
    %9 = vector.extract_strided_slice %4 {offsets = [1, 0], sizes = [8, 80], strides = [1, 1]} : vector<10x80xbf16> to vector<8x80xbf16>
    %c1 = arith.constant 1 : index
    %c0_8 = arith.constant 0 : index
    %c0_9 = arith.constant 0 : index
    %10 = vector.load %arg3[%c1, %c0_8, %c0_9] : memref<3x80x64xbf16, #tpu.memory_space<vmem>>, vector<1x80x64xbf16>
    %11 = vector.shape_cast %10 : vector<1x80x64xbf16> to vector<80x64xbf16>
    %cst_10 = arith.constant dense<0.000000e+00> : vector<8x64xf32>
    %12 = tpu.matmul %9, %11, %cst_10 {dimension_numbers = #tpu.dot_dimension_numbers<[1], [0], [0], [1], [0, 0, 1, 1], [], []>} : vector<8x80xbf16>, vector<80x64xbf16>, vector<8x64xf32> -> vector<8x64xf32>
    %13 = arith.addf %8, %12 : vector<8x64xf32>
    %14 = vector.extract_strided_slice %4 {offsets = [2, 0], sizes = [8, 80], strides = [1, 1]} : vector<10x80xbf16> to vector<8x80xbf16>
    %c2 = arith.constant 2 : index
    %c0_11 = arith.constant 0 : index
    %c0_12 = arith.constant 0 : index
    %15 = vector.load %arg3[%c2, %c0_11, %c0_12] : memref<3x80x64xbf16, #tpu.memory_space<vmem>>, vector<1x80x64xbf16>
    %16 = vector.shape_cast %15 : vector<1x80x64xbf16> to vector<80x64xbf16>
    %cst_13 = arith.constant dense<0.000000e+00> : vector<8x64xf32>
    %17 = tpu.matmul %14, %16, %cst_13 {dimension_numbers = #tpu.dot_dimension_numbers<[1], [0], [0], [1], [0, 0, 1, 1], [], []>} : vector<8x80xbf16>, vector<80x64xbf16>, vector<8x64xf32> -> vector<8x64xf32>
    %18 = arith.addf %13, %17 : vector<8x64xf32>
    %c0_14 = arith.constant 0 : index
    %c0_15 = arith.constant 0 : index
    %c0_16 = arith.constant 0 : index
    %19 = vector.load %arg4[%c0_14, %c0_15, %c0_16] : memref<1x8x64xf32, #tpu.memory_space<vmem>>, vector<1x8x64xf32>
    %20 = vector.shape_cast %19 : vector<1x8x64xf32> to vector<8x64xf32>
    %cst_17 = arith.constant 8.000000e-01 : f32
    %21 = vector.broadcast %cst_17 : f32 to vector<8x64xf32>
    %22 = arith.mulf %21, %20 : vector<8x64xf32>
    %cst_18 = arith.constant 2.000000e-01 : f32
    %23 = vector.broadcast %cst_18 : f32 to vector<8x64xf32>
    %24 = arith.mulf %23, %18 : vector<8x64xf32>
    %25 = arith.addf %22, %24 : vector<8x64xf32>
    %cst_19 = arith.constant 1.000000e-01 : f32
    %26 = vector.broadcast %cst_19 : f32 to vector<8x64xf32>
    %27 = arith.cmpf oge, %25, %26 : vector<8x64xf32>
    %28 = arith.extui %27 : vector<8x64xi1> to vector<8x64xi32>
    %29 = arith.sitofp %28 : vector<8x64xi32> to vector<8x64xf32>
    %30 = arith.truncf %29 : vector<8x64xf32> to vector<8x64xbf16>
    %c0_20 = arith.constant 0 : index
    %c0_21 = arith.constant 0 : index
    %c0_22 = arith.constant 0 : index
    %31 = vector.load %arg5[%c0_20, %c0_21, %c0_22] : memref<1x8x64xbf16, #tpu.memory_space<vmem>>, vector<1x8x64xbf16>
    %32 = vector.shape_cast %31 : vector<1x8x64xbf16> to vector<8x64xbf16>
    %33 = vector.shape_cast %30 : vector<8x64xbf16> to vector<1x8x64xbf16>
    tpu.vector_store %arg5[%c0_20, %c0_21, %c0_22], %33 {strides = array<i32>} : memref<1x8x64xbf16, #tpu.memory_space<vmem>>, vector<1x8x64xbf16>,
    %cst_23 = arith.constant 0.000000e+00 : f32
    %34 = vector.broadcast %cst_23 : f32 to vector<8x64xf32>
    %35 = arith.select %27, %34, %25 : vector<8x64xi1>, vector<8x64xf32>
    %c0_24 = arith.constant 0 : index
    %c0_25 = arith.constant 0 : index
    %c0_26 = arith.constant 0 : index
    %36 = vector.load %arg6[%c0_24, %c0_25, %c0_26] : memref<1x8x64xf32, #tpu.memory_space<vmem>>, vector<1x8x64xf32>
    %37 = vector.shape_cast %36 : vector<1x8x64xf32> to vector<8x64xf32>
    %38 = vector.shape_cast %35 : vector<8x64xf32> to vector<1x8x64xf32>
    tpu.vector_store %arg6[%c0_24, %c0_25, %c0_26], %38 {strides = array<i32>} : memref<1x8x64xf32, #tpu.memory_space<vmem>>, vector<1x8x64xf32>,
    return
  }
  func.func @transform_0(%arg0: i32) -> (i32, i32, i32) {
    %c0_i32 = arith.constant 0 : i32
    %c0_i32_0 = arith.constant 0 : i32
    %c0_i32_1 = arith.constant 0 : i32
    return %arg0, %c0_i32, %c0_i32_0 : i32, i32, i32
  }
  func.func @transform_1(%arg0: i32) -> (i32, i32) {
    %c0_i32 = arith.constant 0 : i32
    %c0_i32_0 = arith.constant 0 : i32
    %c0_i32_1 = arith.constant 0 : i32
    return %c0_i32, %c0_i32_0 : i32, i32
  }
  func.func @transform_2(%arg0: i32) -> (i32, i32, i32) {
    %c0_i32 = arith.constant 0 : i32
    %c0_i32_0 = arith.constant 0 : i32
    %c0_i32_1 = arith.constant 0 : i32
    %c0_i32_2 = arith.constant 0 : i32
    return %c0_i32, %c0_i32_0, %c0_i32_1 : i32, i32, i32
  }
  func.func @transform_3(%arg0: i32) -> (i32, i32, i32) {
    %c0_i32 = arith.constant 0 : i32
    %c0_i32_0 = arith.constant 0 : i32
    %c0_i32_1 = arith.constant 0 : i32
    return %arg0, %c0_i32, %c0_i32_0 : i32, i32, i32
  }
  func.func @transform_4(%arg0: i32) -> (i32, i32, i32) {
    %c0_i32 = arith.constant 0 : i32
    %c0_i32_0 = arith.constant 0 : i32
    %c0_i32_1 = arith.constant 0 : i32
    return %arg0, %c0_i32, %c0_i32_0 : i32, i32, i32
  }
  func.func @transform_5(%arg0: i32) -> (i32, i32, i32) {
    %c0_i32 = arith.constant 0 : i32
    %c0_i32_0 = arith.constant 0 : i32
    %c0_i32_1 = arith.constant 0 : i32
    return %arg0, %c0_i32, %c0_i32_0 : i32, i32, i32
  }
}

</mosaic_0001>

<bundles_post_ra>
// kernel: spatio_temporal_rf.1
= control target key start
LH: loop header
LB: loop body
LE: loop exit
PB: predicated region body
PF: predicated region fallthrough
CT: control target
= control target key end

     0   :  { %s890_s18 = smov 0   ;;  %s995_s0 = inlined_call_operand.vmem [shape: bf16[2,20,80], index: 0, kind: input, shape index: {}]   ;;  %s996_s1 = inlined_call_operand.vmem [shape: bf16[10,20], index: 1, kind: input, shape index: {}]   ;;  %s997_s2 = inlined_call_operand.vmem [shape: bf16[3,80,64], index: 2, kind: input, shape index: {}]   ;;  %s998_s3 = inlined_call_operand.vmem [shape: f32[2,8,64], index: 3, kind: input, shape index: {}, may-alias: {3,5}]   ;;  %s999_s4 = inlined_call_operand.vmem [shape: bf16[2,8,64], index: 4, kind: output, shape index: {0}]   ;;  %s1000_s5 = inlined_call_operand.vmem [shape: f32[2,8,64], index: 5, kind: output, shape index: {1}, may-alias: {3,5}]  }
   0x1 LB: > { %s691_s19 = sadd.s32 4294967295, %s856_s18   ;;  %p695_p0 = scmp.ge.s32.totalorder %s856_s18, 1  ;;  %s856_s18 = sphi %s890_s18, %s16_s18  }
   0x2   : > { %p199_p1 = scmp.lt.s32.totalorder %s856_s18, 3 }
   0x4   : > { %p200_p2 = pnand %p695_p0, %p199_p1 }
   0x5   : > { %p234_p3 = scmp.lt.s32.totalorder (!%p200_p2), %s691_s19, 1  ;;  %v858_v0 = vmov (!%p200_p2), 0.0   ;;  %vm859_vm0 = vmmov (!%p200_p2), 0   ;;  %v835_v1 = vld [vmem:[%s997_s2] sm:$0xff] (!%p200_p2)   ;;  %v836_v2 = vld [vmem:[%s997_s2 + $0x8] sm:$0xff] (!%p200_p2)   ;;  %v838_v3 = vld [vmem:[%s997_s2 + $0x10] sm:$0xff] (!%p200_p2)  }
   0x6   : > { %203 = sbr.rel (%p200_p2) target bundleno = 484 (0x1e4), region = 36  ;;  %766 = vmatprep.subr.bf16.mxu0 (!%p200_p2), %v858_v0  ;;  %770 = vmatprep.mubr.msk.bf16.mxu0 (!%p200_p2), %vm859_vm0, %v858_v0  ;;  %vm275_vm1 = vcmask (!%p200_p2), 1041408   ;;  %vm271_vm2 = vcmask (!%p200_p2), 162816   ;;  %v834_v7 = vld [vmem:[%s996_s1] sm:$0x1f] (!%p200_p2)   ;;  %v840_v8 = vld [vmem:[%s997_s2 + $0x18] sm:$0xff] (!%p200_p2)  }
   0x7   : > { %788 = vmatprep.subr.bf16.mxu1 (!%p200_p2), %v858_v0  ;;  %798 = vmatprep.mubr.msk.bf16.mxu1 (!%p200_p2), %vm859_vm0, %v858_v0  ;;  %v837_v9 = vld [vmem:[%s997_s2 + $0x28] sm:$0xff] (!%p200_p2)   ;;  %v839_v10 = vld [vmem:[%s997_s2 + $0x30] sm:$0xff] (!%p200_p2)   ;;  %v841_v11 = vld [vmem:[%s997_s2 + $0x38] sm:$0xff] (!%p200_p2)   ;;  %vm379_vm3 = vcmask (!%p200_p2), 654336   ;;  %vm593_vm4 = vcmask (!%p200_p2), 523264   ;;  %vm590_vm6 = vcmask (!%p200_p2), 519168  }
   0x8   : > { %789 = vmatpush3.bf16.msra.mxu1 (!%p200_p2), %v835_v1  ;;  %v842_v12 = vld [vmem:[%s997_s2 + $0x20] sm:$0xff] (!%p200_p2)   ;;  %v845_v14 = vld [vmem:[%s997_s2 + $0x48] sm:$0xff] (!%p200_p2)   ;;  %v844_v18 = vld [vmem:[%s997_s2 + $0x50] sm:$0xff] (!%p200_p2)  }
   0x9   : > { %790 = vmatprep.subr.bf16.mxu1 (!%p200_p2), %v858_v0  ;;  %v843_v13 = vld [vmem:[%s997_s2 + $0x40] sm:$0xff] (!%p200_p2)   ;;  %v846_v22 = vld [vmem:[%s997_s2 + $0x58] sm:$0xff] (!%p200_p2)   ;;  %v848_v27 = vld [vmem:[%s997_s2 + $0x68] sm:$0xff] (!%p200_p2)  }
   0xa   : > { %v847_v26 = vld [vmem:[%s997_s2 + $0x60] sm:$0xff] (!%p200_p2)   ;;  %v849_v28 = vld [vmem:[%s997_s2 + $0x70] sm:$0xff] (!%p200_p2)  }
   0xc   : > { %791 = vmatpush3.bf16.msra.mxu1 (!%p200_p2), %v836_v2 }
   0xd   : > { %s1002_s19 = smov (!%p234_p3, %s691_s19), 1  ;;  %792 = vmatprep.subr.bf16.mxu1 %v858_v0 }
   0xe   : > { %s821_s24 = smul.u32 12, %s1002_s19  ;;  %s697_s8 = sshll.u32 %s1002_s19, 3 }
   0xf   : > { %s242_s11 = scalar_lea.vmem %s998_s3, %s697_s8  ;;  %s698_s12 = sshll.u32 %s1002_s19, 2 }
  0x10   : > { %s238_s27 = scalar_lea.vmem %s995_s0, %s821_s24  ;;  %793 = vmatpush3.bf16.msra.mxu1 %v838_v3  ;;  %v582_v34 = vld [vmem:[%s242_s11] sm:$0xff]  ;;  %s250_s15 = scalar_lea.vmem %s1000_s5, %s697_s8 }
  0x11   : > { %v832_v4 = vld [vmem:[%s238_s27] sm:$0xff]   ;;  %v833_v5 = vld [vmem:[%s238_s27 + $0x8] ss:$0 sps:$4 sm:$0x33]   ;;  %794 = vmatprep.subr.bf16.mxu1 %v858_v0  ;;  %v583_v37 = vmul.f32 0.8, %v582_v34  ;;  %s246_s20 = scalar_lea.vmem %s999_s4, %s698_s12 }
  0x12   : > { %767 = vmatpush3.bf16.msra.mxu0 %v832_v4  ;;  %v277_v6 = vsel %vm275_vm1, %v833_v5, 0 }
  0x13   : > { %768 = vmatprep.subr.bf16.mxu0 %v858_v0 }
  0x14   : > { %795 = vmatpush3.bf16.msra.mxu1 %v840_v8 }
  0x15   : > { %796 = vmatprep.subr.bf16.mxu1 %v858_v0 }
  0x16   : > { %769 = vmatpush3.bf16.msra.mxu0 %v277_v6 }
  0x17   : > { %774 = vmatprep.subr.bf16.mxu0 %v858_v0 }
  0x18   : > { %797 = vmatpush3.bf16.msra.mxu1 %v842_v12 }
  0x19   : > { %771 = vmatmul.mubr.msk.bf16.vlgmr.msra.gmra.mrb[0].mxu0 %vm271_vm2, %v834_v7  ;;  %802 = vmatprep.subr.bf16.mxu1 %v858_v0 }
  0x1a   : > { %775 = vmatpush3.bf16.msra.mxu0 %v837_v9  ;;  %784 = vmatprep.mubr.msk.bf16.mxu0 %vm859_vm0, %v858_v0 }
  0x1b   : > { %776 = vmatprep.subr.bf16.mxu0 %v858_v0 }
  0x1e   : > { %777 = vmatpush3.bf16.msra.mxu0 %v839_v10 }
  0x1f   : > { %778 = vmatprep.subr.bf16.mxu0 %v858_v0 }
  0x22   : > { %779 = vmatpush3.bf16.msra.mxu0 %v841_v11 }
  0x23   : > { %780 = vmatprep.subr.bf16.mxu0 %v858_v0 }
  0x26   : > { %781 = vmatpush3.bf16.msra.mxu0 %v843_v13 }
  0x27   : > { %782 = vmatprep.subr.bf16.mxu0 %v858_v0 }
  0x2a   : > { %783 = vmatpush3.bf16.msra.mxu0 %v845_v14 }
  0xec   : > { %v313_v15 = vpop.f32.mrb[0].mxu0 }
  0xed   : > { %v772_v16 = vpop.f32.mrb[1].mxu0 }
  0xee   : > { %v316_v17 = vpop.f32.mrb[2].mxu0 }
  0xef   : > { %v320_v19 = vpack.c.bf16 %v316_v17, %v313_v15  ;;  %v773_v20 = vpop.f32.mrb[3].mxu0 }
  0xf1   : > { %v345_v21 = vshll.u32 %v320_v19, 16  ;;  %799 = vmatmul.mubr.msk.bf16.vlgmr.msra.gmra.mrb[0].mxu1 %vm379_vm3, %v320_v19  ;;  %v343_v23 = vshrl.u32 %v320_v19, 16  ;;  %v507_v29 = vrot.slane %v320_v19, 1 }
  0xf2   : > { %803 = vmatpush3.bf16.msra.mxu1 %v844_v18  ;;  %812 = vmatprep.mubr.msk.bf16.mxu1 %vm859_vm0, %v858_v0 }
  0xf3   : > { %v347_v24 = vrot.slane %v345_v21, 1  ;;  %804 = vmatprep.subr.bf16.mxu1 %v858_v0 }
  0xf5   : > { %v348_v25 = vor.u32 %v347_v24, %v343_v23 }
  0xf6   : > { %805 = vmatpush3.bf16.msra.mxu1 %v846_v22 }
  0xf7   : > { %785 = vmatmul.mubr.msk.bf16.vlgmr.msra.gmra.mrb[4].mxu0 %vm379_vm3, %v348_v25  ;;  %806 = vmatprep.subr.bf16.mxu1 %v858_v0 }
  0xfa   : > { %807 = vmatpush3.bf16.msra.mxu1 %v847_v26 }
  0xfb   : > { %808 = vmatprep.subr.bf16.mxu1 %v858_v0 }
  0xfe   : > { %809 = vmatpush3.bf16.msra.mxu1 %v848_v27 }
  0xff   : > { %810 = vmatprep.subr.bf16.mxu1 %v858_v0 }
 0x102   : > { %811 = vmatpush3.bf16.msra.mxu1 %v849_v28 }
 0x105   : > { %813 = vmatmul.mubr.msk.bf16.vlgmr.msra.gmra.mrb[0].mxu1 %vm379_vm3, %v507_v29 }
 0x1ca   : > { %v417_v30 = vpop.f32.mrb[4].mxu0 }
 0x1cb   : > { %v786_v31 = vpop.f32.mrb[5].mxu0 }
 0x1cc   : > { %v420_v32 = vpop.f32.mrb[6].mxu0 }
 0x1cd   : > { %v787_v33 = vpop.f32.mrb[7].mxu0 }
 0x1d8   : > { %v575_v35 = vpop.f32.mrb[0].mxu1 }
 0x1d9   : > { %v816_v36 = vadd.f32 %v575_v35, %v417_v30  ;;  %v814_v38 = vpop.f32.mrb[1].mxu1 }
 0x1da   : > { %v578_v39 = vpop.f32.mrb[2].mxu1 }
 0x1db   : > { %v584_v40 = vmul.f32 0.2, %v816_v36  ;;  %v815_v41 = vpop.f32.mrb[3].mxu1 }
 0x1dd   : > { %v585_v42 = vadd.f32 %v584_v40, %v583_v37 }
 0x1df   : > { %vm586_vm5 = vcmp.ge.f32.partialorder %v585_v42, 0.1 }
 0x1e0   : > { %v742_v43 = vsel %vm586_vm5, 1.0, %v858_v0  ;;  %v592_v44 = vsel %vm586_vm5, 0.0, %v585_v42 }
 0x1e1   : > { %v589_v45 = vpack.c.bf16 %v742_v43, %v742_v43  ;;  %594 = vst.msk [vmem:[%s250_s15] sm:$0xff] %vm593_vm4, %v592_v44 }
 0x1e3   : > { %591 = vst.msk [vmem:[%s246_s20] sm:$0xf] %vm590_vm6, %v589_v45 }
 0x1e4 PF: > { %s16_s18 = sadd.s32 1, %s856_s18  }
 0x1e5   : > { %p13_p4 = scmp.ge.s32.totalorder %s16_s18, 4  }
 0x1e7   :  { %15 = sbr.rel (!%p13_p4) target bundleno = 1 (0x1), region = 83 }

</bundles_post_ra>
